<compile_context>
chip_gen: v7x
topology: tpu7x:2x2x1
jax: 0.10.0
libtpu: 0.0.40
codegen_flags: <defaults>
</compile_context>

<pallas_src>
import math
import functools

import jax
import jax.numpy as jnp
from jax import lax
from jax.experimental import pallas as pl
from jax.experimental.pallas import tpu as pltpu


# Finite "minus infinity": avoids NaNs from exp(-inf - (-inf)) in tiles whose
# rows are fully masked under the online softmax.
_NEG_INF = -1e30


def _pick_tile(dim, target, align):
    """Largest multiple of `align` dividing `dim` that is <= target.

    Falls back to the full dimension (always a legal BlockSpec block)."""
    if dim <= target:
        return dim
    t = (target // align) * align
    while t >= align:
        if dim % t == 0:
            return t
        t -= align
    return dim


# ---------------------------------------------------------------------------
# Kernel 1: bias GEMM for in_proj over the flattened (B*S, D) token axis.
# ---------------------------------------------------------------------------
def _linear_kernel(x_ref, w_ref, b_ref, o_ref, acc_ref):
    @pl.when(pl.program_id(2) == 0)
    def _init():
        acc_ref[...] = jnp.zeros_like(acc_ref)

    # Operands stay in their input dtype; f32 accumulation on the MXU.
    acc_ref[...] += jnp.dot(x_ref[...], w_ref[...],
                            preferred_element_type=jnp.float32)

    @pl.when(pl.program_id(2) == pl.num_programs(2) - 1)
    def _finalize():
        o_ref[...] = (acc_ref[...] + b_ref[...].astype(jnp.float32)
                      ).astype(o_ref.dtype)


def _linear(x2d, w, b, *, tm_target=256, tn_target=256, tk_target=512):
    """y = x2d @ w + b with x2d:(M, K), w:(K, N), b:(N,)."""
    M, K = x2d.shape
    _, N = w.shape
    tm = _pick_tile(M, tm_target, 8)
    tk = _pick_tile(K, tk_target, 128)
    tn = _pick_tile(N, tn_target, 128)
    grid = (M // tm, N // tn, K // tk)
    itemsize = jnp.dtype(x2d.dtype).itemsize
    cost = pl.CostEstimate(
        flops=2 * M * K * N,
        transcendentals=0,
        bytes_accessed=(M * K + K * N + N + M * N) * itemsize)
    return pl.pallas_call(
        _linear_kernel,
        out_shape=jax.ShapeDtypeStruct((M, N), x2d.dtype),
        grid_spec=pltpu.PrefetchScalarGridSpec(
            num_scalar_prefetch=0,
            grid=grid,
            in_specs=[
                pl.BlockSpec((tm, tk), lambda i, j, k: (i, k)),
                pl.BlockSpec((tk, tn), lambda i, j, k: (k, j)),
                pl.BlockSpec((1, tn), lambda i, j, k: (0, j)),
            ],
            out_specs=pl.BlockSpec((tm, tn), lambda i, j, k: (i, j)),
            scratch_shapes=[pltpu.VMEM((tm, tn), jnp.float32)],
        ),
        compiler_params=pltpu.CompilerParams(
            dimension_semantics=("parallel", "parallel", "arbitrary"),
            vmem_limit_bytes=32 * 1024 * 1024),
        cost_estimate=cost,
    )(x2d, w, b.reshape(1, -1))


# ---------------------------------------------------------------------------
# Kernel 2: flash attention (online softmax over kv tiles) with fused out_proj.
# ---------------------------------------------------------------------------
def _flash_attn_kernel(q_ref, k_ref, v_ref, w_out_ref, b_out_ref, o_ref,
                       acc_ref, m_ref, l_ref, *,
                       n_heads, d_head, tq, tkv, causal):
    qi = pl.program_id(1)
    ki = pl.program_id(2)

    @pl.when(ki == 0)
    def _init():
        acc_ref[...] = jnp.zeros_like(acc_ref)
        m_ref[...] = jnp.full_like(m_ref, _NEG_INF)
        l_ref[...] = jnp.zeros_like(l_ref)

    def _process_kv_tile():
        # Fold 1/sqrt(d_head) into q: S*D multiplies instead of H*S*S.
        q = q_ref[0] * (1.0 / math.sqrt(d_head))        # (TQ, D), input dtype
        k = k_ref[0]                                    # (TKV, D)
        v = v_ref[0]                                    # (TKV, D)
        if causal:
            row = qi * tq + lax.broadcasted_iota(jnp.int32, (tq, tkv), 0)
            col = ki * tkv + lax.broadcasted_iota(jnp.int32, (tq, tkv), 1)
            mask = col > row                            # strict upper triangle
        # Static loop over heads with static lane slices: no head transposes.
        for h in range(n_heads):
            sl = slice(h * d_head, (h + 1) * d_head)
            qh, kh, vh = q[:, sl], k[:, sl], v[:, sl]
            s = lax.dot_general(qh, kh, (((1,), (1,)), ((), ())),
                                preferred_element_type=jnp.float32)  # (TQ,TKV)
            if causal:
                s = jnp.where(mask, _NEG_INF, s)
            m_prev = m_ref[h]                                        # (TQ, 1)
            m_new = jnp.maximum(m_prev, jnp.max(s, axis=-1, keepdims=True))
            alpha = jnp.exp(m_prev - m_new)                          # f32
            p = jnp.exp(s - m_new)                                   # f32
            l_ref[h] = alpha * l_ref[h] + jnp.sum(p, axis=-1, keepdims=True)
            # Cast probabilities back to the value dtype for the PV matmul.
            acc_ref[h] = alpha * acc_ref[h] + jnp.dot(
                p.astype(vh.dtype), vh, preferred_element_type=jnp.float32)
            m_ref[h] = m_new

    if causal:
        # Skip kv tiles that lie entirely above the causal diagonal.
        @pl.when(ki * tkv <= (qi + 1) * tq - 1)
        def _():
            _process_kv_tile()
    else:
        _process_kv_tile()

    @pl.when(ki == pl.num_programs(2) - 1)
    def _finalize():
        parts = []
        for h in range(n_heads):
            l = l_ref[h]
            inv_l = pl.reciprocal(l, approx=True)      # EUP slot (cheap)
            inv_l = inv_l * (2.0 - l * inv_l)          # one Newton step -> ~f32
            parts.append(acc_ref[h] * inv_l)           # (TQ, d_head) f32
        ctx = jnp.concatenate(parts, axis=-1)          # (TQ, D) f32
        # Fused out_proj: context never leaves VMEM.
        out = jnp.dot(ctx.astype(w_out_ref.dtype), w_out_ref[...],
                      preferred_element_type=jnp.float32)
        out = out + b_out_ref[...].astype(jnp.float32)
        o_ref[0] = out.astype(o_ref.dtype)


def _flash_attention(q, k, v, w_out, b_out, *, n_heads, causal,
                     tq_target=256, tkv_target=256):
    B, S, D = q.shape
    d_head = D // n_heads
    tq = _pick_tile(S, tq_target, 8)
    tkv = _pick_tile(S, tkv_target, 8)
    grid = (B, S // tq, S // tkv)
    kernel = functools.partial(_flash_attn_kernel, n_heads=n_heads,
                               d_head=d_head, tq=tq, tkv=tkv, causal=causal)
    itemsize = jnp.dtype(q.dtype).itemsize
    cost = pl.CostEstimate(
        flops=4 * B * n_heads * S * S * d_head + 2 * B * S * D * D,
        transcendentals=B * n_heads * S * S,
        bytes_accessed=(4 * B * S * D + D * D + D) * itemsize)
    return pl.pallas_call(
        kernel,
        out_shape=jax.ShapeDtypeStruct((B, S, D), q.dtype),
        grid_spec=pltpu.PrefetchScalarGridSpec(
            num_scalar_prefetch=0,
            grid=grid,
            in_specs=[
                pl.BlockSpec((1, tq, D), lambda b, i, j: (b, i, 0)),
                pl.BlockSpec((1, tkv, D), lambda b, i, j: (b, j, 0)),
                pl.BlockSpec((1, tkv, D), lambda b, i, j: (b, j, 0)),
                pl.BlockSpec((D, D), lambda b, i, j: (0, 0)),
                pl.BlockSpec((1, D), lambda b, i, j: (0, 0)),
            ],
            out_specs=pl.BlockSpec((1, tq, D), lambda b, i, j: (b, i, 0)),
            scratch_shapes=[
                pltpu.VMEM((n_heads, tq, d_head), jnp.float32),   # ctx acc
                pltpu.VMEM((n_heads, tq, 1), jnp.float32),        # running max
                pltpu.VMEM((n_heads, tq, 1), jnp.float32),        # running sum
            ],
        ),
        compiler_params=pltpu.CompilerParams(
            dimension_semantics=("parallel", "parallel", "arbitrary"),
            vmem_limit_bytes=32 * 1024 * 1024),
        cost_estimate=cost,
    )(q, k, v, w_out, b_out.reshape(1, -1))


# ---------------------------------------------------------------------------
# Public wrapper: matches the PyTorch SelfAttention.forward semantics.
# Linear weights are (in_features, out_features): y = x @ W + b.
# ---------------------------------------------------------------------------
def self_attention(x, w_in, b_in, w_out, b_out, *, n_heads, causal_mask=False):
    """x: (B, S, D); w_in: (D, 3D); b_in: (3D,); w_out: (D, D); b_out: (D,)."""
    B, S, D = x.shape
    # in_proj as one lane-dense GEMM over the flattened token axis.
    qkv = _linear(x.reshape(B * S, D), w_in, b_in).reshape(B, S, 3 * D)
    q, k, v = jnp.split(qkv, 3, axis=-1)
    return _flash_attention(q, k, v, w_out, b_out,
                            n_heads=n_heads, causal=bool(causal_mask))


def self_attention_ref(x, w_in, b_in, w_out, b_out, *, n_heads,
                       causal_mask=False):
    """Pure-JAX reference mirroring the PyTorch forward."""
    B, S, D = x.shape
    d_head = D // n_heads
    qkv = x @ w_in + b_in
    q, k, v = jnp.split(qkv, 3, axis=-1)

    def heads(t):
        return t.reshape(B, S, n_heads, d_head).transpose(0, 2, 1, 3)

    q, k, v = heads(q), heads(k), heads(v)
    scores = jnp.einsum('bhqd,bhkd->bhqk', q, k)
    if causal_mask:
        mask = jnp.triu(jnp.ones((S, S), dtype=bool), k=1)
        scores = jnp.where(mask[None, None], -jnp.inf, scores)
    scores = scores / math.sqrt(d_head)
    p = jax.nn.softmax(scores, axis=-1)
    ctx = jnp.einsum('bhqk,bhkd->bhqd', p, v)
    ctx = ctx.transpose(0, 2, 1, 3).reshape(B, S, D)
    return ctx @ w_out + b_out


if __name__ == "__main__":
    # Small shapes consistent with the module: batch=2, seq=8, d_embed=32, heads=4
    B, S, D, H = 2, 8, 32, 4
    key = jax.random.PRNGKey(0)
    kx, kwi, kbi, kwo, kbo = jax.random.split(key, 5)

    x = jax.random.normal(kx, (B, S, D), dtype=jnp.float32)
    # Deterministic synthetic parameters (not a checkpoint load).
    w_in = jax.random.normal(kwi, (D, 3 * D), dtype=jnp.float32) * 0.05
    b_in = jax.random.normal(kbi, (3 * D,), dtype=jnp.float32) * 0.05
    w_out = jax.random.normal(kwo, (D, D), dtype=jnp.float32) * 0.05
    b_out = jax.random.normal(kbo, (D,), dtype=jnp.float32) * 0.05

    for causal in (False, True):
        out = self_attention(x, w_in, b_in, w_out, b_out,
                             n_heads=H, causal_mask=causal)
        out = jax.block_until_ready(out)
        ref = self_attention_ref(x, w_in, b_in, w_out, b_out,
                                 n_heads=H, causal_mask=causal)
        assert out.shape == (B, S, D)
        assert jnp.allclose(out, ref, atol=1e-3, rtol=1e-3), (
            f"mismatch (causal={causal})")

    print("KERNEL_OK")
</pallas_src>

<mosaic_0001>
module attributes {stable_mosaic.version = 11 : i64} {
  func.func @_linear_kernel(%arg0: i32, %arg1: i32, %arg2: i32, %arg3: memref<16x32xf32, #tpu.memory_space<vmem>>, %arg4: memref<32x96xf32, #tpu.memory_space<vmem>>, %arg5: memref<1x96xf32, #tpu.memory_space<vmem>>, %arg6: memref<16x96xf32, #tpu.memory_space<vmem>>, %arg7: memref<16x96xf32, #tpu.memory_space<vmem>>) attributes {dimension_semantics = [#tpu.dimension_semantics<parallel>, #tpu.dimension_semantics<parallel>, #tpu.dimension_semantics<arbitrary>], iteration_bounds = array<i64: 1, 1, 1>, scalar_prefetch = 0 : i64, scratch_operands = 1 : i64, tpu.core_type = #tpu.core_type<tc>, window_params = [{transform_indices = @transform_0, window_bounds = array<i64: 16, 32>}, {transform_indices = @transform_1, window_bounds = array<i64: 32, 96>}, {transform_indices = @transform_2, window_bounds = array<i64: 1, 96>}, {transform_indices = @transform_3, window_bounds = array<i64: 16, 96>}]} {
    %c0_i32 = arith.constant 0 : i32
    %0 = arith.cmpi eq, %arg2, %c0_i32 : i32
    %1 = arith.extui %0 : i1 to i32
    %c0_i32_0 = arith.constant 0 : i32
    %2 = arith.cmpi ne, %1, %c0_i32_0 : i32
    scf.if %2 {
      %cst_10 = arith.constant 0.000000e+00 : f32
      %12 = vector.broadcast %cst_10 : f32 to vector<16x96xf32>
      %c0_11 = arith.constant 0 : index
      %c0_12 = arith.constant 0 : index
      %13 = vector.load %arg7[%c0_11, %c0_12] : memref<16x96xf32, #tpu.memory_space<vmem>>, vector<16x96xf32>
      tpu.vector_store %arg7[%c0_11, %c0_12], %12 {strides = array<i32>} : memref<16x96xf32, #tpu.memory_space<vmem>>, vector<16x96xf32>,
    } else {
    }
    %c0 = arith.constant 0 : index
    %c0_1 = arith.constant 0 : index
    %3 = vector.load %arg7[%c0, %c0_1] : memref<16x96xf32, #tpu.memory_space<vmem>>, vector<16x96xf32>
    %c0_2 = arith.constant 0 : index
    %c0_3 = arith.constant 0 : index
    %4 = vector.load %arg3[%c0_2, %c0_3] : memref<16x32xf32, #tpu.memory_space<vmem>>, vector<16x32xf32>
    %c0_4 = arith.constant 0 : index
    %c0_5 = arith.constant 0 : index
    %5 = vector.load %arg4[%c0_4, %c0_5] : memref<32x96xf32, #tpu.memory_space<vmem>>, vector<32x96xf32>
    %cst = arith.constant dense<0.000000e+00> : vector<16x96xf32>
    %6 = tpu.matmul %4, %5, %cst {dimension_numbers = #tpu.dot_dimension_numbers<[1], [0], [0], [1], [0, 0, 1, 1], [], []>} : vector<16x32xf32>, vector<32x96xf32>, vector<16x96xf32> -> vector<16x96xf32>
    %7 = arith.addf %3, %6 : vector<16x96xf32>
    %c0_6 = arith.constant 0 : index
    %c0_7 = arith.constant 0 : index
    %8 = vector.load %arg7[%c0_6, %c0_7] : memref<16x96xf32, #tpu.memory_space<vmem>>, vector<16x96xf32>
    tpu.vector_store %arg7[%c0_6, %c0_7], %7 {strides = array<i32>} : memref<16x96xf32, #tpu.memory_space<vmem>>, vector<16x96xf32>,
    %c0_i32_8 = arith.constant 0 : i32
    %9 = arith.cmpi eq, %arg2, %c0_i32_8 : i32
    %10 = arith.extui %9 : i1 to i32
    %c0_i32_9 = arith.constant 0 : i32
    %11 = arith.cmpi ne, %10, %c0_i32_9 : i32
    scf.if %11 {
      %c0_10 = arith.constant 0 : index
      %c0_11 = arith.constant 0 : index
      %12 = vector.load %arg7[%c0_10, %c0_11] : memref<16x96xf32, #tpu.memory_space<vmem>>, vector<16x96xf32>
      %c0_12 = arith.constant 0 : index
      %c0_13 = arith.constant 0 : index
      %13 = vector.load %arg5[%c0_12, %c0_13] : memref<1x96xf32, #tpu.memory_space<vmem>>, vector<1x96xf32>
      %14 = vector.broadcast %13 : vector<1x96xf32> to vector<16x96xf32>
      %15 = arith.addf %12, %14 : vector<16x96xf32>
      %c0_14 = arith.constant 0 : index
      %c0_15 = arith.constant 0 : index
      %16 = vector.load %arg6[%c0_14, %c0_15] : memref<16x96xf32, #tpu.memory_space<vmem>>, vector<16x96xf32>
      tpu.vector_store %arg6[%c0_14, %c0_15], %15 {strides = array<i32>} : memref<16x96xf32, #tpu.memory_space<vmem>>, vector<16x96xf32>,
    } else {
    }
    return
  }
  func.func @transform_0(%arg0: i32, %arg1: i32, %arg2: i32) -> (i32, i32) {
    %c0_i32 = arith.constant 0 : i32
    return %arg0, %arg2 : i32, i32
  }
  func.func @transform_1(%arg0: i32, %arg1: i32, %arg2: i32) -> (i32, i32) {
    %c0_i32 = arith.constant 0 : i32
    return %arg2, %arg1 : i32, i32
  }
  func.func @transform_2(%arg0: i32, %arg1: i32, %arg2: i32) -> (i32, i32) {
    %c0_i32 = arith.constant 0 : i32
    %c0_i32_0 = arith.constant 0 : i32
    return %c0_i32, %arg1 : i32, i32
  }
  func.func @transform_3(%arg0: i32, %arg1: i32, %arg2: i32) -> (i32, i32) {
    %c0_i32 = arith.constant 0 : i32
    return %arg0, %arg1 : i32, i32
  }
}

</mosaic_0001>

<bundles_post_ra>
// kernel: tpu_custom_call.1
= control target key start
LH: loop header
LB: loop body
LE: loop exit
PB: predicated region body
PF: predicated region fallthrough
CT: control target
= control target key end

     0   :  { %8 = vsyncpa [#allocation4], 0  ;;  %s365_s0 = inlined_call_operand.hbm [shape: f32[16,32], index: 0, kind: input, shape index: {}]   ;;  %s366_s1 = inlined_call_operand.hbm [shape: f32[32,96], index: 1, kind: input, shape index: {}]   ;;  %s367_s2 = inlined_call_operand.vmem [shape: f32[1,96], index: 2, kind: input, shape index: {}]   ;;  %s368_s3 = inlined_call_operand.hbm [shape: f32[16,96], index: 3, kind: output, shape index: {}]  }
   0x1   :  { %9 = vsyncpa [#allocation7], 0 }
   0x2   :  { %10 = vsyncpa [#allocation5], 0  ;;  %s285_s12 = smov [#allocation3]   ;;  %s213_s16 = scalar_lea.hbm %s365_s0, 256 }
   0x3   :  { %s16_s13 = sshll.u32 %s285_s12, 4  ;;  %p214_p0 = scmp.ne.s32.totalorder %s365_s0, %s213_s16  ;;  %s17_s13 = int_to_ptr.vmem [resolvable:$true] %s16_s13 }
   0x4   :  { %p217_p1 = scmp.lt.u32.totalorder %s213_s16, %s365_s0 }
   0x6   :  { %p219_p2 = pnand %p217_p1, %p214_p0 }
   0x8   :  { %222 = shalt.err (!%p219_p2)
}
   0x9   :  { %s223_s21 = scalar_lea.vmem %s17_s13, 256  ;;  %p228_p4 = scmp.lt.s32.totalorder %s17_s13, %s17_s13 }
   0xa   :  { %p224_p3 = scmp.ne.s32.totalorder %s17_s13, %s223_s21  ;;  %p229_p5 = scmp.lt.s32.totalorder %s223_s21, %s223_s21 }
   0xc   :  { %p230_p6 = por %p229_p5, %p228_p4 }
   0xe   :  { %p231_p7 = pnand %p230_p6, %p224_p3 }
  0x10   :  { %234 = shalt.err (!%p231_p7)
}
  0x11   :  { %s286_s22 = smov 128   ;;  %s287_s23 = smov 8  }
  0x12   :  { %22 = dma.hbm_to_vmem [thread:$0]  %s365_s0, 256, %s17_s13, [#allocation4], %s286_s22, %s286_s22, %s287_s23  }
  0x13   :  { %s288_s26 = smov [#allocation6]   ;;  %s235_s30 = scalar_lea.hbm %s366_s1, 512 }
  0x14   :  { %s28_s27 = sshll.u32 %s288_s26, 4  ;;  %p236_p8 = scmp.ne.s32.totalorder %s366_s1, %s235_s30  ;;  %s29_s27 = int_to_ptr.vmem [resolvable:$true] %s28_s27 }
  0x15   :  { %p239_p9 = scmp.lt.u32.totalorder %s235_s30, %s366_s1 }
  0x17   :  { %p241_p10 = pnand %p239_p9, %p236_p8 }
  0x19   :  { %244 = shalt.err (!%p241_p10)
}
  0x1a   :  { %s245_s8 = scalar_lea.vmem %s29_s27, 512  ;;  %p250_p12 = scmp.lt.s32.totalorder %s29_s27, %s29_s27 }
  0x1b   :  { %p246_p11 = scmp.ne.s32.totalorder %s29_s27, %s245_s8  ;;  %p251_p13 = scmp.lt.s32.totalorder %s245_s8, %s245_s8 }
  0x1d   :  { %p252_p0 = por %p251_p13, %p250_p12 }
  0x1f   :  { %p253_p1 = pnand %p252_p0, %p246_p11 }
  0x21   :  { %256 = shalt.err (!%p253_p1)
}
  0x22   :  { %34 = dma.hbm_to_vmem [thread:$0]  %s366_s1, 512, %s29_s27, [#allocation7], %s286_s22, %s286_s22, %s287_s23  }
  0x23   :  { %279 = dma.done.wait [#allocation4], 256  }
  0x24   :  { %280 = vsyncadd [#allocation4], 4294967040 }
  0x25   :  { %281 = dma.done.wait [#allocation7], 512  }
  0x26   :  { %282 = vsyncadd [#allocation7], 4294966784  ;;  %vm47_vm0 = vcmask 785408   ;;  %v289_v0 = vmov 0.0   ;;  %vm58_vm1 = vcmask 261120   ;;  %v54_v1 = vld [vmem:[#allocation6] sm:$0xff] }
  0x27   :  { %49 = vst.msk [vmem:[#allocation2 + $0x8] sm:$0xff] %vm47_vm0, %v289_v0  ;;  %48 = vst.msk [vmem:[#allocation2] sm:$0xff] %vm47_vm0, %v289_v0  ;;  %v55_v2 = vld [vmem:[#allocation6 + $0x8] sm:$0xff]  ;;  %v56_v3 = vld [vmem:[#allocation6 + $0x10] sm:$0xff]  ;;  %s290_s11 = smov [#allocation8]  }
  0x28   :  { %v199_v4 = vpack.c.bf16 %v55_v2, %v54_v1  ;;  %v57_v5 = vld [vmem:[#allocation6 + $0x18] sm:$0xff]  ;;  %v52_v6 = vld [vmem:[#allocation3] sm:$0xff]  ;;  %v181_v15 = vld [vmem:[%s367_s2] ss:$0 sm:$0xff]  ;;  %s166_s12 = sshll.u32 %s290_s11, 4  ;;  %s167_s12 = int_to_ptr.vmem [resolvable:$true] %s166_s12 }
  0x29   :  { %v203_v7 = vpack.c.bf16 %v57_v5, %v56_v3  ;;  %196 = vmatprep.mubr.msk.f32.mxu0 %vm58_vm1, %v52_v6  ;;  %v53_v8 = vld [vmem:[#allocation3 + $0x8] sm:$0xff]  ;;  %s257_s13 = scalar_lea.vmem %s167_s12, 256  ;;  %p262_p3 = scmp.lt.s32.totalorder %s167_s12, %s167_s12 }
  0x2a   :  { %200 = vmatprep.subr.bf16.mxu0 %v199_v4  ;;  %p258_p2 = scmp.ne.s32.totalorder %s167_s12, %s257_s13  ;;  %p263_p4 = scmp.lt.s32.totalorder %s257_s13, %s257_s13 }
  0x2b   :  { %202 = vmatpush3.bf16.msra.mxu0 %v199_v4 }
  0x2c   :  { %204 = vmatprep.subr.bf16.mxu0 %v203_v7  ;;  %p264_p5 = por %p263_p4, %p262_p3 }
  0x2e   :  { %v51_v9 = vld [vmem:[#allocation2 + $0x8] sm:$0xff]  ;;  %v50_v10 = vld [vmem:[#allocation2] sm:$0xff]  ;;  %p265_p6 = pnand %p264_p5, %p258_p2 }
  0x2f   :  { %206 = vmatpush3.bf16.msra.mxu0 %v203_v7 }
  0x32   :  { %197 = vmatmul.mubr.msk.f32.vlgmr.msra.gmra.mrb[0].mxu0 %vm58_vm1, %v53_v8 }
 0x105   :  { %v198_v11 = vpop.f32.mrb[0].mxu0 }
 0x106   :  { %v141_v12 = vadd.f32 %v198_v11, %v51_v9  ;;  %v131_v13 = vpop.f32.mrb[1].mxu0 }
 0x107   :  { %v140_v14 = vadd.f32 %v131_v13, %v50_v10 }
 0x108   :  { %144 = vst.msk [vmem:[#allocation2 + $0x8] sm:$0xff] %vm47_vm0, %v141_v12 }
 0x109   :  { %143 = vst.msk [vmem:[#allocation2] sm:$0xff] %vm47_vm0, %v140_v14 }
 0x10f   :  { %v149_v16 = vld [vmem:[#allocation2 + $0x8] sm:$0xff] }
 0x110   :  { %v148_v17 = vld [vmem:[#allocation2] sm:$0xff]  ;;  %v158_v18 = vadd.f32 %v181_v15, %v149_v16 }
 0x111   :  { %v157_v19 = vadd.f32 %v181_v15, %v148_v17 }
 0x112   :  { %160 = vst.msk [vmem:[#allocation8 + $0x8] sm:$0xff] %vm47_vm0, %v158_v18 }
 0x113   :  { %159 = vst.msk [vmem:[#allocation8] sm:$0xff] %vm47_vm0, %v157_v19 }
 0x114   :  { %268 = shalt.err (!%p265_p6)
}
 0x115   :  { %s269_s15 = scalar_lea.hbm %s368_s3, 256 }
 0x116   :  { %p270_p7 = scmp.ne.s32.totalorder %s368_s3, %s269_s15  ;;  %p273_p8 = scmp.lt.u32.totalorder %s269_s15, %s368_s3 }
 0x118   :  { %p275_p9 = pnand %p273_p8, %p270_p7 }
 0x11a   :  { %278 = shalt.err (!%p275_p9)
}
 0x11b   :  { %172 = dma.vmem_to_hbm [thread:$0]  %s167_s12, 256, %s368_s3, [#allocation5], %s286_s22, %s286_s22, %s287_s23  }
 0x11c   :  { %283 = dma.done.wait [#allocation5], 256  }
 0x11d   :  { %284 = vsyncadd [#allocation5], 4294967040 }
 0x11e   :  { %176 = vsyncpa [#allocation4], 1 }
 0x11f   :  { %177 = vsyncpa [#allocation7], 1 }
 0x120   :  { %178 = vsyncpa [#allocation5], 1 }

</bundles_post_ra>
